<compile_context>
chip_gen: v6e
topology: v6e:2x2x1
jax: 0.10.0
libtpu: 0.0.40
codegen_flags: <defaults>
</compile_context>

<pallas_src>
import functools
import math
from dataclasses import dataclass

import jax
import jax.numpy as jnp
from jax.experimental import pallas as pl
from jax.experimental.pallas import tpu as pltpu


# ------------------------------ tiling helper ------------------------------ #

def _pick_block(full, target, align, *, divisor_only=False):
    """Largest block <= target, multiple of `align`, preferring divisors of `full`."""
    if full <= target:
        return full
    t = max((target // align) * align, align)
    for cand in range(t, align - 1, -align):
        if full % cand == 0:
            return cand
    # No aligned divisor: ragged edge blocks are fine for row/col-independent
    # axes; reduction / sequence axes fall back to the full extent (always exact).
    return full if divisor_only else t


# ----------------------- fused LayerNorm + matmul (+GELU) ------------------ #

def _ln_matmul_kernel(x_ref, g_ref, bta_ref, w_ref, b_ref, o_ref, h_ref, *, gelu):
    # LayerNorm (and the f32->bf16 cast) is computed once per row tile and
    # cached in VMEM scratch; every N tile reuses it.
    @pl.when(pl.program_id(1) == 0)
    def _():
        x = x_ref[...]                                       # (tm, K) f32
        mu = jnp.mean(x, axis=-1, keepdims=True)
        var = jnp.mean(jnp.square(x - mu), axis=-1, keepdims=True)
        h = (x - mu) * jax.lax.rsqrt(var + 1e-5) * g_ref[...] + bta_ref[...]
        h_ref[...] = h.astype(h_ref.dtype)                   # bf16 scratch

    y = jnp.dot(h_ref[...], w_ref[...], preferred_element_type=jnp.float32)
    y = y + b_ref[...]
    if gelu:
        # GELU(approximate='tanh'), kept in f32 (v5e has no bf16 VPU/EUP).
        c = 0.7978845608028654  # sqrt(2/pi)
        y = 0.5 * y * (1.0 + jnp.tanh(c * (y + 0.044715 * y * y * y)))
    o_ref[...] = y.astype(o_ref.dtype)


def ln_matmul(x, gamma, beta, w, b, *, gelu=False, out_dtype=jnp.bfloat16,
              tm=256, tn=512):
    """LayerNorm(x) @ w + b (+GELU). x:(M,K) f32, w:(K,N) bf16, b:(N,) f32."""
    M, K = x.shape
    N = w.shape[1]
    tm = _pick_block(M, tm, 8)
    tn = _pick_block(N, tn, 128)
    kern = functools.partial(_ln_matmul_kernel, gelu=gelu)
    return pl.pallas_call(
        kern,
        out_shape=jax.ShapeDtypeStruct((M, N), out_dtype),
        grid=(pl.cdiv(M, tm), pl.cdiv(N, tn)),
        in_specs=[pl.BlockSpec((tm, K), lambda i, j: (i, 0)),
                  pl.BlockSpec((1, K), lambda i, j: (0, 0)),
                  pl.BlockSpec((1, K), lambda i, j: (0, 0)),
                  pl.BlockSpec((K, tn), lambda i, j: (0, j)),
                  pl.BlockSpec((1, tn), lambda i, j: (0, j))],
        out_specs=pl.BlockSpec((tm, tn), lambda i, j: (i, j)),
        scratch_shapes=[pltpu.VMEM((tm, K), jnp.bfloat16)],
        compiler_params=pltpu.CompilerParams(
            dimension_semantics=("parallel", "arbitrary")),
    )(x, gamma, beta, w, b.reshape(1, N))


# ----------------- matmul + bias + residual (K-tiled, f32 acc) ------------- #

def _matmul_res_kernel(x_ref, w_ref, b_ref, r_ref, o_ref, acc_ref):
    k = pl.program_id(2)

    @pl.when(k == 0)
    def _():
        acc_ref[...] = jnp.zeros_like(acc_ref)

    w = w_ref[...]                                           # (tk, tn) bf16
    acc_ref[...] += jnp.dot(x_ref[...].astype(w.dtype), w,
                            preferred_element_type=jnp.float32)

    @pl.when(k == pl.num_programs(2) - 1)
    def _():
        o_ref[...] = (acc_ref[...] + b_ref[...] + r_ref[...]).astype(o_ref.dtype)


def matmul_bias_residual(x, w, b, res, *, tm=256, tn=256, tk=512):
    """x @ w + b + res. x:(M,K) bf16/f32, w:(K,N) bf16, b:(N,) f32, res:(M,N) f32."""
    M, K = x.shape
    N = w.shape[1]
    tm = _pick_block(M, tm, 8)
    tn = _pick_block(N, tn, 128)
    tk = _pick_block(K, tk, 128, divisor_only=True)   # K must tile exactly
    return pl.pallas_call(
        _matmul_res_kernel,
        out_shape=jax.ShapeDtypeStruct((M, N), jnp.float32),
        grid=(pl.cdiv(M, tm), pl.cdiv(N, tn), pl.cdiv(K, tk)),
        in_specs=[pl.BlockSpec((tm, tk), lambda i, j, k: (i, k)),
                  pl.BlockSpec((tk, tn), lambda i, j, k: (k, j)),
                  pl.BlockSpec((1, tn), lambda i, j, k: (0, j)),
                  pl.BlockSpec((tm, tn), lambda i, j, k: (i, j))],
        out_specs=pl.BlockSpec((tm, tn), lambda i, j, k: (i, j)),
        scratch_shapes=[pltpu.VMEM((tm, tn), jnp.float32)],
        input_output_aliases={3: 0},   # residual buffer is reused for the output
        compiler_params=pltpu.CompilerParams(
            dimension_semantics=("parallel", "parallel", "arbitrary")),
    )(x, w, b.reshape(1, N), res)


# ------------------- flash-style causal self-attention --------------------- #

def _flash_attn_kernel(q_ref, k_ref, v_ref, o_ref, m_ref, l_ref, acc_ref,
                       *, scale, tq, tk):
    qi = pl.program_id(1)
    ki = pl.program_id(2)

    @pl.when(ki == 0)
    def _():
        m_ref[...] = jnp.full_like(m_ref, -jnp.inf)
        l_ref[...] = jnp.zeros_like(l_ref)
        acc_ref[...] = jnp.zeros_like(acc_ref)

    # Causal tile skipping: kv tiles entirely above the diagonal do no compute.
    @pl.when(ki * tk <= qi * tq + (tq - 1))
    def _():
        # Fold the softmax scale into q (tq*hd mults instead of tq*tk).
        q = (q_ref[0].astype(jnp.float32) * scale).astype(jnp.bfloat16)
        k = k_ref[0]
        v = v_ref[0]
        # q @ k.T without materializing the transpose (contract on head_dim).
        s = jax.lax.dot_general(q, k, (((1,), (1,)), ((), ())),
                                preferred_element_type=jnp.float32)   # (tq, tk)
        row = qi * tq + jax.lax.broadcasted_iota(jnp.int32, (tq, tk), 0)
        col = ki * tk + jax.lax.broadcasted_iota(jnp.int32, (tq, tk), 1)
        s = jnp.where(row >= col, s, -1e30)

        m_prev = m_ref[...]
        m_new = jnp.maximum(m_prev, jnp.max(s, axis=-1, keepdims=True))
        alpha = jnp.exp(m_prev - m_new)
        p = jnp.exp(s - m_new)
        l_ref[...] = alpha * l_ref[...] + jnp.sum(p, axis=-1, keepdims=True)
        acc_ref[...] = alpha * acc_ref[...] + jnp.dot(
            p.astype(v.dtype), v, preferred_element_type=jnp.float32)
        m_ref[...] = m_new

    @pl.when(ki == pl.num_programs(2) - 1)
    def _():
        # Normalize once on the (tq, hd) accumulator instead of the (tq, tk) p.
        inv = pl.reciprocal(l_ref[...], approx=True)
        o_ref[0] = (acc_ref[...] * inv).astype(o_ref.dtype)


def flash_causal_attention(q, k, v, *, tq=256, tk=256):
    """q, k, v: (B*n_head, T, hd) bf16; returns (B*n_head, T, hd) bf16."""
    BH, T, hd = q.shape
    tq = _pick_block(T, tq, 8, divisor_only=True)
    tk = _pick_block(T, tk, 8, divisor_only=True)
    scale = 1.0 / math.sqrt(hd)
    kern = functools.partial(_flash_attn_kernel, scale=scale, tq=tq, tk=tk)
    return pl.pallas_call(
        kern,
        out_shape=jax.ShapeDtypeStruct((BH, T, hd), q.dtype),
        grid=(BH, T // tq, T // tk),
        in_specs=[pl.BlockSpec((1, tq, hd), lambda b, qi, ki: (b, qi, 0)),
                  pl.BlockSpec((1, tk, hd), lambda b, qi, ki: (b, ki, 0)),
                  pl.BlockSpec((1, tk, hd), lambda b, qi, ki: (b, ki, 0))],
        out_specs=pl.BlockSpec((1, tq, hd), lambda b, qi, ki: (b, qi, 0)),
        scratch_shapes=[pltpu.VMEM((tq, 1), jnp.float32),    # running max
                        pltpu.VMEM((tq, 1), jnp.float32),    # running denom
                        pltpu.VMEM((tq, hd), jnp.float32)],  # output accumulator
        compiler_params=pltpu.CompilerParams(
            dimension_semantics=("parallel", "parallel", "arbitrary")),
    )(q, k, v)


def causal_self_attention(qkv, B, T, n_head):
    """qkv: (B*T, 3C) bf16 packed [q|k|v]; returns (B*T, C) bf16."""
    C = qkv.shape[-1] // 3
    hd = C // n_head
    qkv = qkv.reshape(B, T, 3, n_head, hd)
    # Head split / (B, nH, T, hd) layout is cheap XLA glue (contiguous copies).
    q = jnp.transpose(qkv[:, :, 0], (0, 2, 1, 3)).reshape(B * n_head, T, hd)
    k = jnp.transpose(qkv[:, :, 1], (0, 2, 1, 3)).reshape(B * n_head, T, hd)
    v = jnp.transpose(qkv[:, :, 2], (0, 2, 1, 3)).reshape(B * n_head, T, hd)
    y = flash_causal_attention(q, k, v)                       # (B*nH, T, hd) bf16
    y = jnp.transpose(y.reshape(B, n_head, T, hd), (0, 2, 1, 3))
    return y.reshape(B * T, C)


# ------------------- final LayerNorm + tied lm_head (no bias) -------------- #

def _ln_lm_head_kernel(x_ref, g_ref, bta_ref, wt_ref, o_ref, h_ref):
    # LN computed once per row tile (first of ~V/tv vocab tiles), cached in VMEM.
    @pl.when(pl.program_id(1) == 0)
    def _():
        x = x_ref[...]                                       # (tm, C) f32
        mu = jnp.mean(x, axis=-1, keepdims=True)
        var = jnp.mean(jnp.square(x - mu), axis=-1, keepdims=True)
        h = (x - mu) * jax.lax.rsqrt(var + 1e-5) * g_ref[...] + bta_ref[...]
        h_ref[...] = h.astype(h_ref.dtype)

    # logits = h @ wte.T without materializing the transpose; no bias.
    o_ref[...] = jax.lax.dot_general(
        h_ref[...], wt_ref[...], (((1,), (1,)), ((), ())),
        preferred_element_type=jnp.float32).astype(o_ref.dtype)


def ln_lm_head(x, gamma, beta, wte, *, tm=512, tv=512):
    M, K = x.shape
    V = wte.shape[0]
    tm = _pick_block(M, tm, 8)
    tv = _pick_block(V, tv, 128)
    return pl.pallas_call(
        _ln_lm_head_kernel,
        out_shape=jax.ShapeDtypeStruct((M, V), jnp.float32),
        grid=(pl.cdiv(M, tm), pl.cdiv(V, tv)),
        in_specs=[pl.BlockSpec((tm, K), lambda i, j: (i, 0)),
                  pl.BlockSpec((1, K), lambda i, j: (0, 0)),
                  pl.BlockSpec((1, K), lambda i, j: (0, 0)),
                  pl.BlockSpec((tv, K), lambda i, j: (j, 0))],
        out_specs=pl.BlockSpec((tm, tv), lambda i, j: (i, j)),
        scratch_shapes=[pltpu.VMEM((tm, K), jnp.bfloat16)],
        compiler_params=pltpu.CompilerParams(
            dimension_semantics=("parallel", "arbitrary")),
    )(x, gamma, beta, wte)


# ------------------------------ GPT forward -------------------------------- #

@dataclass
class GPTConfig:
    block_size: int = 16
    vocab_size: int = 64
    n_layer: int = 2
    n_head: int = 2
    n_embd: int = 32


def init_params(key, cfg):
    C, V = cfg.n_embd, cfg.vocab_size
    keys = jax.random.split(key, 2 + 4 * cfg.n_layer)

    def normal(k, shape, dtype=jnp.bfloat16):
        return (0.02 * jax.random.normal(k, shape, dtype=jnp.float32)).astype(dtype)

    def ln():
        return (jnp.ones((1, C), jnp.float32), jnp.zeros((1, C), jnp.float32))

    params = dict(
        wte=normal(keys[0], (V, C)),                        # bf16, tied with lm_head
        wpe=normal(keys[1], (cfg.block_size, C), jnp.float32),
        blocks=[],
        ln_f=ln(),
    )
    for l in range(cfg.n_layer):
        k0, k1, k2, k3 = keys[2 + 4 * l: 6 + 4 * l]
        # Linear weights stored (in, out) = transpose of torch nn.Linear.weight.
        params["blocks"].append(dict(
            ln1=ln(),
            attn_w=normal(k0, (C, 3 * C)), attn_b=jnp.zeros((3 * C,), jnp.float32),
            proj_w=normal(k1, (C, C)),     proj_b=jnp.zeros((C,), jnp.float32),
            ln2=ln(),
            fc_w=normal(k2, (C, 4 * C)),   fc_b=jnp.zeros((4 * C,), jnp.float32),
            mproj_w=normal(k3, (4 * C, C)), mproj_b=jnp.zeros((C,), jnp.float32),
        ))
    return params


def gpt_forward(params, idx, cfg):
    B, T = idx.shape
    C, nH, V = cfg.n_embd, cfg.n_head, cfg.vocab_size

    # Embedding gathers are glue (plain JAX); hot-path math is in Pallas kernels.
    tok_emb = jnp.take(params["wte"], idx, axis=0).astype(jnp.float32)   # (B, T, C)
    pos_emb = params["wpe"][:T]                                          # (T, C)
    x = (tok_emb + pos_emb[None, :, :]).reshape(B * T, C)                # f32 residual stream

    for blk in params["blocks"]:
        # --- attention sub-block: LN1+QKV fused, flash attention, proj+residual fused ---
        qkv = ln_matmul(x, *blk["ln1"], blk["attn_w"], blk["attn_b"])    # (B*T, 3C) bf16
        att = causal_self_attention(qkv, B, T, nH)                       # (B*T, C) bf16
        x = matmul_bias_residual(att, blk["proj_w"], blk["proj_b"], x)   # x + proj(att), f32
        # --- MLP sub-block: LN2+fc+GELU fused, proj+residual fused ---
        h = ln_matmul(x, *blk["ln2"], blk["fc_w"], blk["fc_b"], gelu=True)  # (B*T, 4C) bf16
        x = matmul_bias_residual(h, blk["mproj_w"], blk["mproj_b"], x)      # x + proj(h), f32

    # Final LayerNorm fused with the tied lm_head (h @ wte.T, no transpose copy, no bias).
    logits = ln_lm_head(x, *params["ln_f"], params["wte"])               # (B*T, V) f32
    # TODO(synk): cross-entropy loss branch (target is not None) not implemented;
    # this reproduces forward(idx, target=None) -> logits.
    return logits.reshape(B, T, V)


if __name__ == "__main__":
    cfg = GPTConfig(block_size=16, vocab_size=64, n_layer=2, n_head=2, n_embd=32)
    key = jax.random.PRNGKey(0)
    pkey, ikey = jax.random.split(key)
    params = init_params(pkey, cfg)

    B, T = 2, 8
    idx = jax.random.randint(ikey, (B, T), 0, cfg.vocab_size, dtype=jnp.int32)

    logits = jax.block_until_ready(gpt_forward(params, idx, cfg))
    assert logits.shape == (B, T, cfg.vocab_size)
    assert bool(jnp.all(jnp.isfinite(logits)))
    print("KERNEL_OK")
</pallas_src>

<mosaic_0001>
module attributes {stable_mosaic.version = 11 : i64} {
  func.func @_ln_matmul_kernel(%arg0: i32, %arg1: i32, %arg2: memref<16x32xf32, #tpu.memory_space<vmem>>, %arg3: memref<1x32xf32, #tpu.memory_space<vmem>>, %arg4: memref<1x32xf32, #tpu.memory_space<vmem>>, %arg5: memref<32x96xbf16, #tpu.memory_space<vmem>>, %arg6: memref<1x96xf32, #tpu.memory_space<vmem>>, %arg7: memref<16x96xbf16, #tpu.memory_space<vmem>>, %arg8: memref<16x32xbf16, #tpu.memory_space<vmem>>) attributes {dimension_semantics = [#tpu.dimension_semantics<parallel>, #tpu.dimension_semantics<arbitrary>], iteration_bounds = array<i64: 1, 1>, scalar_prefetch = 0 : i64, scratch_operands = 1 : i64, tpu.core_type = #tpu.core_type<tc>, window_params = [{transform_indices = @transform_0, window_bounds = array<i64: 16, 32>}, {pipeline_mode = #tpu.pipeline_mode<synchronous>, transform_indices = @transform_1, window_bounds = array<i64: 1, 32>}, {pipeline_mode = #tpu.pipeline_mode<synchronous>, transform_indices = @transform_2, window_bounds = array<i64: 1, 32>}, {transform_indices = @transform_3, window_bounds = array<i64: 32, 96>}, {transform_indices = @transform_4, window_bounds = array<i64: 1, 96>}, {transform_indices = @transform_5, window_bounds = array<i64: 16, 96>}]} {
    %c0_i32 = arith.constant 0 : i32
    %0 = arith.cmpi eq, %arg1, %c0_i32 : i32
    %1 = arith.extui %0 : i1 to i32
    %c0_i32_0 = arith.constant 0 : i32
    %2 = arith.cmpi ne, %1, %c0_i32_0 : i32
    scf.if %2 {
      %c0_8 = arith.constant 0 : index
      %c0_9 = arith.constant 0 : index
      %11 = vector.load %arg2[%c0_8, %c0_9] : memref<16x32xf32, #tpu.memory_space<vmem>>, vector<16x32xf32>
      %cst_10 = arith.constant dense<0.000000e+00> : vector<16xf32>
      %12 = vector.multi_reduction <add>, %11, %cst_10 [1] : vector<16x32xf32> to vector<16xf32>
      %13 = vector.shape_cast %12 : vector<16xf32> to vector<16x1xf32>
      %cst_11 = arith.constant 3.200000e+01 : f32
      %14 = vector.broadcast %cst_11 : f32 to vector<16x1xf32>
      %15 = arith.divf %13, %14 : vector<16x1xf32>
      %16 = vector.broadcast %15 : vector<16x1xf32> to vector<16x32xf32>
      %17 = arith.subf %11, %16 : vector<16x32xf32>
      %18 = arith.mulf %17, %17 : vector<16x32xf32>
      %cst_12 = arith.constant dense<0.000000e+00> : vector<16xf32>
      %19 = vector.multi_reduction <add>, %18, %cst_12 [1] : vector<16x32xf32> to vector<16xf32>
      %20 = vector.shape_cast %19 : vector<16xf32> to vector<16x1xf32>
      %cst_13 = arith.constant 3.200000e+01 : f32
      %21 = vector.broadcast %cst_13 : f32 to vector<16x1xf32>
      %22 = arith.divf %20, %21 : vector<16x1xf32>
      %23 = vector.broadcast %15 : vector<16x1xf32> to vector<16x32xf32>
      %24 = arith.subf %11, %23 : vector<16x32xf32>
      %cst_14 = arith.constant 9.99999974E-6 : f32
      %25 = vector.broadcast %cst_14 : f32 to vector<16x1xf32>
      %26 = arith.addf %22, %25 : vector<16x1xf32>
      %27 = math.rsqrt %26 : vector<16x1xf32>
      %28 = vector.broadcast %27 : vector<16x1xf32> to vector<16x32xf32>
      %29 = arith.mulf %24, %28 : vector<16x32xf32>
      %c0_15 = arith.constant 0 : index
      %c0_16 = arith.constant 0 : index
      %30 = vector.load %arg3[%c0_15, %c0_16] : memref<1x32xf32, #tpu.memory_space<vmem>>, vector<1x32xf32>
      %31 = vector.broadcast %30 : vector<1x32xf32> to vector<16x32xf32>
      %32 = arith.mulf %29, %31 : vector<16x32xf32>
      %c0_17 = arith.constant 0 : index
      %c0_18 = arith.constant 0 : index
      %33 = vector.load %arg4[%c0_17, %c0_18] : memref<1x32xf32, #tpu.memory_space<vmem>>, vector<1x32xf32>
      %34 = vector.broadcast %33 : vector<1x32xf32> to vector<16x32xf32>
      %35 = arith.addf %32, %34 : vector<16x32xf32>
      %36 = arith.truncf %35 : vector<16x32xf32> to vector<16x32xbf16>
      %c0_19 = arith.constant 0 : index
      %c0_20 = arith.constant 0 : index
      %37 = vector.load %arg8[%c0_19, %c0_20] : memref<16x32xbf16, #tpu.memory_space<vmem>>, vector<16x32xbf16>
      tpu.vector_store %arg8[%c0_19, %c0_20], %36 {strides = array<i32>} : memref<16x32xbf16, #tpu.memory_space<vmem>>, vector<16x32xbf16>,
    } else {
    }
    %c0 = arith.constant 0 : index
    %c0_1 = arith.constant 0 : index
    %3 = vector.load %arg8[%c0, %c0_1] : memref<16x32xbf16, #tpu.memory_space<vmem>>, vector<16x32xbf16>
    %c0_2 = arith.constant 0 : index
    %c0_3 = arith.constant 0 : index
    %4 = vector.load %arg5[%c0_2, %c0_3] : memref<32x96xbf16, #tpu.memory_space<vmem>>, vector<32x96xbf16>
    %cst = arith.constant dense<0.000000e+00> : vector<16x96xf32>
    %5 = tpu.matmul %3, %4, %cst {dimension_numbers = #tpu.dot_dimension_numbers<[1], [0], [0], [1], [0, 0, 1, 1], [], []>} : vector<16x32xbf16>, vector<32x96xbf16>, vector<16x96xf32> -> vector<16x96xf32>
    %c0_4 = arith.constant 0 : index
    %c0_5 = arith.constant 0 : index
    %6 = vector.load %arg6[%c0_4, %c0_5] : memref<1x96xf32, #tpu.memory_space<vmem>>, vector<1x96xf32>
    %7 = vector.broadcast %6 : vector<1x96xf32> to vector<16x96xf32>
    %8 = arith.addf %5, %7 : vector<16x96xf32>
    %9 = arith.truncf %8 : vector<16x96xf32> to vector<16x96xbf16>
    %c0_6 = arith.constant 0 : index
    %c0_7 = arith.constant 0 : index
    %10 = vector.load %arg7[%c0_6, %c0_7] : memref<16x96xbf16, #tpu.memory_space<vmem>>, vector<16x96xbf16>
    tpu.vector_store %arg7[%c0_6, %c0_7], %9 {strides = array<i32>} : memref<16x96xbf16, #tpu.memory_space<vmem>>, vector<16x96xbf16>,
    return
  }
  func.func @transform_0(%arg0: i32, %arg1: i32) -> (i32, i32) {
    %c0_i32 = arith.constant 0 : i32
    %c0_i32_0 = arith.constant 0 : i32
    return %arg0, %c0_i32 : i32, i32
  }
  func.func @transform_1(%arg0: i32, %arg1: i32) -> (i32, i32) {
    %c0_i32 = arith.constant 0 : i32
    %c0_i32_0 = arith.constant 0 : i32
    %c0_i32_1 = arith.constant 0 : i32
    return %c0_i32, %c0_i32_0 : i32, i32
  }
  func.func @transform_2(%arg0: i32, %arg1: i32) -> (i32, i32) {
    %c0_i32 = arith.constant 0 : i32
    %c0_i32_0 = arith.constant 0 : i32
    %c0_i32_1 = arith.constant 0 : i32
    return %c0_i32, %c0_i32_0 : i32, i32
  }
  func.func @transform_3(%arg0: i32, %arg1: i32) -> (i32, i32) {
    %c0_i32 = arith.constant 0 : i32
    %c0_i32_0 = arith.constant 0 : i32
    return %c0_i32, %arg1 : i32, i32
  }
  func.func @transform_4(%arg0: i32, %arg1: i32) -> (i32, i32) {
    %c0_i32 = arith.constant 0 : i32
    %c0_i32_0 = arith.constant 0 : i32
    return %c0_i32, %arg1 : i32, i32
  }
  func.func @transform_5(%arg0: i32, %arg1: i32) -> (i32, i32) {
    %c0_i32 = arith.constant 0 : i32
    return %arg0, %arg1 : i32, i32
  }
}

</mosaic_0001>

<bundles_post_ra>
// kernel: tpu_custom_call.1
= control target key start
LH: loop header
LB: loop body
LE: loop exit
PB: predicated region body
PF: predicated region fallthrough
CT: control target
= control target key end

     0   :  { %10 = vsyncpa [#allocation4], 0  ;;  %s393_s0 = inlined_call_operand.hbm [shape: f32[16,32], index: 0, kind: input, shape index: {}]   ;;  %s394_s1 = inlined_call_operand.vmem [shape: f32[1,32], index: 1, kind: input, shape index: {}]   ;;  %s395_s2 = inlined_call_operand.vmem [shape: f32[1,32], index: 2, kind: input, shape index: {}]   ;;  %s396_s3 = inlined_call_operand.hbm [shape: bf16[32,96], index: 3, kind: input, shape index: {}]   ;;  %s397_s4 = inlined_call_operand.vmem [shape: f32[1,96], index: 4, kind: input, shape index: {}]   ;;  %s398_s5 = inlined_call_operand.hbm [shape: bf16[16,96], index: 5, kind: output, shape index: {}]  }
   0x1   :  { %11 = vsyncpa [#allocation7], 0 }
   0x2   :  { %12 = vsyncpa [#allocation5], 0  ;;  %s325_s18 = smov [#allocation3]  }
   0x3   :  { %s18_s19 = sshll.u32 %s325_s18, 4  ;;  %s19_s19 = int_to_ptr.vmem [resolvable:$true] %s18_s19 }
   0x4   :  { %s267_s20 = scalar_lea.vmem %s19_s19, 256  ;;  %p272_p1 = scmp.lt.s32.totalorder %s19_s19, %s19_s19 }
   0x5   :  { %p268_p0 = scmp.ne.s32.totalorder %s19_s19, %s267_s20  ;;  %p273_p2 = scmp.lt.s32.totalorder %s267_s20, %s267_s20 }
   0x7   :  { %p274_p3 = por %p273_p2, %p272_p1 }
   0x9   :  { %p275_p4 = pnand %p274_p3, %p268_p0 }
   0xb   :  { %278 = shalt.err (!%p275_p4)
}
   0xc   :  { %s326_s21 = smov 128   ;;  %s327_s22 = smov 8  }
   0xd   :  { %24 = dma.hbm_to_vmem [thread:$0]  %s393_s0, 256, %s19_s19, [#allocation4], %s326_s21, %s326_s21, %s327_s22  }
   0xe   :  { %s328_s25 = smov [#allocation6]  }
   0xf   :  { %s34_s26 = sshll.u32 %s328_s25, 4  ;;  %s35_s26 = int_to_ptr.vmem [resolvable:$true] %s34_s26 }
  0x10   :  { %s287_s27 = scalar_lea.vmem %s35_s26, 256  ;;  %p292_p6 = scmp.lt.s32.totalorder %s35_s26, %s35_s26 }
  0x11   :  { %p288_p5 = scmp.ne.s32.totalorder %s35_s26, %s287_s27  ;;  %p293_p7 = scmp.lt.s32.totalorder %s287_s27, %s287_s27 }
  0x13   :  { %p294_p8 = por %p293_p7, %p292_p6 }
  0x15   :  { %p295_p9 = pnand %p294_p8, %p288_p5 }
  0x17   :  { %298 = shalt.err (!%p295_p9)
}
  0x18   :  { %s329_s28 = smov 64   ;;  %s330_s29 = smov 4  }
  0x19   :  { %40 = dma.hbm_to_vmem [thread:$0]  %s396_s3, 256, %s35_s26, [#allocation7], %s329_s28, %s329_s28, %s330_s29  }
  0x1a   :  { %319 = dma.done.wait [#allocation4], 256  }
  0x1b   :  { %320 = vsyncadd [#allocation4], 4294967040 }
  0x1c   :  { %321 = dma.done.wait [#allocation7], 256  }
  0x1d   :  { %322 = vsyncadd [#allocation7], 4294967040  ;;  %vm56_vm0 = vcmask 261120   ;;  %v54_v0 = vld [vmem:[#allocation3] sm:$0xff]  ;;  %v55_v1 = vld [vmem:[#allocation3 + $0x8] sm:$0xff]  ;;  %v331_v15 = vmov 0.0  }
  0x1e   :  { %v57_v2 = vsel %vm56_vm0, %v54_v0, 0.0  ;;  %v60_v3 = vsel %vm56_vm0, %v55_v1, 0.0  ;;  %v252_v14 = vld [vmem:[#allocation6 + $0x8] sm:$0xff]   ;;  %235 = vmatprep.subr.bf16.mxu0 %v331_v15  ;;  %vm332_vm1 = vmmov 0   ;;  %v253_v16 = vld [vmem:[#allocation6] sm:$0xff]   ;;  %vm110_vm2 = vcmask 257024  }
  0x1f   :  { %58 = vadd.xlane.f32.xlu0 %v57_v2  ;;  %239 = vmatprep.mubr.msk.bf16.mxu0 %vm332_vm1, %v331_v15  ;;  %v217_v24 = vld [vmem:[%s394_s1] ss:$0 sm:$0xff]  ;;  %vm196_vm3 = vcmask 781312  }
  0x20   :  { %236 = vmatpush3.bf16.msra.mxu0 %v252_v14  ;;  %v218_v26 = vld [vmem:[%s395_s2] ss:$0 sm:$0xff]  ;;  %s333_s2 = smov [#allocation8]  }
  0x21   :  { %237 = vmatprep.subr.bf16.mxu0 %v331_v15  ;;  %v221_v36 = vld [vmem:[%s397_s4] ss:$0 sm:$0xff]  ;;  %s204_s10 = sshll.u32 %s333_s2, 4  ;;  %s205_s10 = int_to_ptr.vmem [resolvable:$true] %s204_s10 }
  0x22   :  { %s299_s11 = scalar_lea.vmem %s205_s10, 128  ;;  %p304_p11 = scmp.lt.s32.totalorder %s205_s10, %s205_s10 }
  0x23   :  { %61 = vadd.xlane.f32.xlu0 %v60_v3  ;;  %p300_p10 = scmp.ne.s32.totalorder %s205_s10, %s299_s11  ;;  %p305_p12 = scmp.lt.s32.totalorder %s299_s11, %s299_s11 }
  0x24   :  { %238 = vmatpush3.bf16.msra.mxu0 %v253_v16 }
  0x25   :  { %p306_p13 = por %p305_p12, %p304_p11 }
  0x27   :  { %p307_p0 = pnand %p306_p13, %p300_p10 }
  0xa8   :  { %v59_v4 = vpop.xlane.xlu0 %58 }
  0xa9   :  { %v64_v5 = vmul.f32 0.03125, %v59_v4 }
  0xab   :  { %v66_v6 = vsub.f32 %v54_v0, %v64_v5 }
  0xac   :  { %v62_v7 = vpop.xlane.xlu0 %61 }
  0xad   :  { %v65_v8 = vmul.f32 0.03125, %v62_v7  ;;  %v68_v9 = vmul.f32 %v66_v6, %v66_v6 }
  0xaf   :  { %v67_v10 = vsub.f32 %v55_v1, %v65_v8  ;;  %v70_v11 = vsel %vm56_vm0, %v68_v9, 0.0 }
  0xb0   :  { %71 = vadd.xlane.f32.xlu1 %v70_v11 }
  0xb1   :  { %v69_v12 = vmul.f32 %v67_v10, %v67_v10 }
  0xb3   :  { %v73_v13 = vsel %vm56_vm0, %v69_v12, 0.0 }
  0xb4   :  { %74 = vadd.xlane.f32.xlu1 %v73_v13 }
 0x139   :  { %v72_v17 = vpop.xlane.xlu1 %71 }
 0x13a   :  { %v76_v18 = vmul.f32 0.03125, %v72_v17 }
 0x13c   :  { %v78_v19 = vadd.f32 1e-05, %v76_v18 }
 0x13d   :  { %v75_v20 = vpop.xlane.xlu1 %74 }
 0x13e   :  { %255 = vrsqrt.f32 %v78_v19  ;;  %v77_v21 = vmul.f32 0.03125, %v75_v20 }
 0x140   :  { %v79_v22 = vadd.f32 1e-05, %v77_v21 }
 0x142   :  { %257 = vrsqrt.f32 %v79_v22 }
 0x14b   :  { %v256_v23 = vpop.eup %255 }
 0x14c   :  { %v82_v25 = vmul.f32 %v256_v23, %v66_v6 }
 0x14e   :  { %v91_v27 = vmul.f32 %v217_v24, %v82_v25 }
 0x14f   :  { %v258_v28 = vpop.eup %257 }
 0x150   :  { %v100_v29 = vadd.f32 %v218_v26, %v91_v27  ;;  %v83_v30 = vmul.f32 %v258_v28, %v67_v10 }
 0x152   :  { %v228_v31 = vpack.c.bf16 %v100_v29, %v100_v29  ;;  %v92_v32 = vmul.f32 %v217_v24, %v83_v30 }
 0x154   :  { %111 = vst.msk [vmem:[#allocation2] sm:$0xf] %vm110_vm2, %v228_v31  ;;  %v101_v33 = vadd.f32 %v218_v26, %v92_v32 }
 0x156   :  { %v229_v34 = vpack.c.bf16 %v101_v33, %v101_v33 }
 0x158   :  { %112 = vst.msk [vmem:[#allocation2 + $0x4] sm:$0xf] %vm110_vm2, %v229_v34 }
 0x15f   :  { %v254_v35 = vld [vmem:[#allocation2] sm:$0xff]  }
 0x160   :  { %240 = vmatmul.mubr.msk.bf16.vlgmr.msra.gmra.mxu0 %vm56_vm0, %v254_v35 }
 0x220   :  { %v181_v37 = vpop.f32.mrf.mxu0 }
 0x221   :  { %v182_v38 = vadd.f32 %v221_v36, %v181_v37 }
 0x222   :  { %v241_v39 = vpop.f32.mrf.mxu0 }
 0x223   :  { %v230_v40 = vpack.c.bf16 %v182_v38, %v182_v38 }
 0x224   :  { %v184_v41 = vpop.f32.mrf.mxu0 }
 0x225   :  { %v185_v42 = vadd.f32 %v221_v36, %v184_v41  ;;  %197 = vst.msk [vmem:[#allocation8] sm:$0xf] %vm196_vm3, %v230_v40 }
 0x226   :  { %v242_v43 = vpop.f32.mrf.mxu0 }
 0x227   :  { %v231_v44 = vpack.c.bf16 %v185_v42, %v185_v42 }
 0x229   :  { %198 = vst.msk [vmem:[#allocation8 + $0x4] sm:$0xf] %vm196_vm3, %v231_v44 }
 0x22a   :  { %310 = shalt.err (!%p307_p0)
}
 0x22b   :  { %210 = dma.vmem_to_hbm [thread:$0]  %s205_s10, 128, %s398_s5, [#allocation5], %s329_s28, %s329_s28, %s330_s29  }
 0x22c   :  { %323 = dma.done.wait [#allocation5], 128  }
 0x22d   :  { %324 = vsyncadd [#allocation5], 4294967168 }
 0x22e   :  { %214 = vsyncpa [#allocation4], 1 }
 0x22f   :  { %215 = vsyncpa [#allocation7], 1 }
 0x230   :  { %216 = vsyncpa [#allocation5], 1 }

</bundles_post_ra>
